<compile_context>
chip_gen: v6e
topology: v6e:2x2x1
jax: 0.10.0
libtpu: 0.0.40
codegen_flags: <defaults>
</compile_context>

<pallas_src>
import jax
import jax.numpy as jnp
import numpy as np
from jax.experimental import pallas as pl
from jax.experimental.pallas import tpu as pltpu

FC_HIDDEN = 16  # fc head hidden width (Linear(hidden,16) -> ReLU -> Linear(16,1))


def _stock_lstm_kernel(x_ref, p_ref, out_ref):
    """x_ref: (B, T, I) f32; p_ref: packed params (rows, 8H) f32; out_ref: (B, 1)."""
    B, T, I = x_ref.shape
    H = p_ref.shape[1] // 8          # hidden size (gate width)
    G = 2 * H                        # combined (layer0 | layer1) width

    # ---- Static slices of the single packed parameter buffer (one DMA for all params).
    off = 0
    W = p_ref[off:off + 2 * H, :]            # (2H, 8H) fused recurrent weights
    off += 2 * H
    fcw1 = p_ref[off:off + H, 0:FC_HIDDEN]   # (H, 16)
    off += H
    fcw2 = p_ref[off:off + FC_HIDDEN, 0:1]   # (16, 1)
    off += FC_HIDDEN
    w0c = p_ref[off:off + I, :]              # (I, 8H)  input->gates (layer-1 cols = 0)
    off += I
    b0c = p_ref[off:off + 1, :]              # (1, 8H)  b_ih0+b_hh0 (layer-1 cols = 0)
    off += 1
    b1c = p_ref[off:off + 1, :]              # (1, 8H)  b_ih1+b_hh1 (layer-0 cols = 0)
    off += 1
    fcb1 = p_ref[off:off + 1, 0:FC_HIDDEN]   # (1, 16)
    off += 1
    fcb2 = p_ref[off:off + 1, 0:1]           # (1, 1)

    # ---- Hoisted layer-0 input projection into the combined/interleaved gate layout.
    # K = I = 2 -> two VPU broadcast FMAs, not an MXU pass.  (B,T,8H)=(2,8,256) is
    # sublane/lane dense.  Layer-1 columns of w0c/b0c are zero, so they stay untouched.
    xv = x_ref[...]                                            # (B, T, I)
    xproj = b0c + xv[:, :, 0:1] * w0c[0:1, :]                  # (B, T, 8H)
    for k in range(1, I):
        xproj = xproj + xv[:, :, k:k + 1] * w0c[k:k + 1, :]

    def fused_cell(gates, c):
        # gates: (B, 8H) with interleaved blocks [i0 i1 | f0 f1 | g0 g1 | o0 o1];
        # c: (B, 2H) combined [c0 | c1].  Full-vreg sigmoid/tanh, then lane-slice.
        sg = jax.nn.sigmoid(gates)
        th = jnp.tanh(gates)
        i = sg[:, 0 * G:1 * G]
        f = sg[:, 1 * G:2 * G]
        g = th[:, 2 * G:3 * G]
        o = sg[:, 3 * G:4 * G]
        c_new = f * c + i * g
        h_new = o * jnp.tanh(c_new)
        return h_new, c_new

    # ---- Wavefront recurrence: T+1 uniform fused steps, one MXU matmul each.
    # Invariant at the start of step k: h = [h0^(k-1) | h1^(k-2)], c likewise
    # (superscript = timestep; negative = initial zeros).
    h = jnp.zeros((B, G), jnp.float32)
    c = jnp.zeros((B, G), jnp.float32)
    for k in range(T + 1):
        rec = jnp.dot(h, W, preferred_element_type=jnp.float32)    # (B, 8H)
        if k == 0:
            # Layer-0 gates for t=0 (h0^(-1)=0); layer-1 half is exactly 0, which keeps
            # (h1, c1) at their zero initial state through this step.
            gates = rec + xproj[:, 0, :]
        elif k < T:
            gates = rec + (xproj[:, k, :] + b1c)
        else:
            # Final step: only the layer-1 half matters (layer-0 half is discarded).
            gates = rec + b1c
        h, c = fused_cell(gates, c)
    h1_last = h[:, H:G]                 # (B, H): top-layer hidden at the last timestep

    # ---- fc head: Linear(H,16) -> ReLU -> Linear(16,1)  (runs once).
    hid = jnp.dot(h1_last, fcw1, preferred_element_type=jnp.float32) + fcb1
    hid = jnp.maximum(hid, 0.0)
    out = jnp.dot(hid, fcw2, preferred_element_type=jnp.float32) + fcb2
    out_ref[...] = out.astype(out_ref.dtype)


def prepare_params(params, input_size=2, hidden_size=32):
    """One-time packing: gate-interleave + stack all weights into a single f32 buffer.

    Packed row layout (width 8H = 256):
      [0   : 2H )  W_comb   fused recurrent weights  (rows: [h0 | h1])
      [2H  : 3H )  fcw1     (cols 0:16)
      [3H  : 3H+16) fcw2    (col 0)
      next I rows  w0c      input projection into combined gate layout
      next 1 row   b0c, then b1c, then fcb1 (cols 0:16), then fcb2 (col 0)
      padded to a multiple of 8 rows.
    Gate column order within 8H: [i0 i1 f0 f1 g0 g1 o0 o1], each H wide.
    """
    wih0, whh0, b0, wih1, whh1, b1, fcw1, fcb1, fcw2, fcb2 = params
    H = hidden_size
    width = 8 * H

    def interleave(a, b):
        # a, b: (rows, 4H) with gate order [i f g o] -> (rows, 8H) interleaved.
        blocks = []
        for g in range(4):
            blocks.append(a[:, g * H:(g + 1) * H])
            blocks.append(b[:, g * H:(g + 1) * H])
        return jnp.concatenate(blocks, axis=1)

    z_h = jnp.zeros((H, 4 * H), jnp.float32)
    z_i = jnp.zeros((input_size, 4 * H), jnp.float32)
    z_1 = jnp.zeros((1, 4 * H), jnp.float32)

    w_comb = jnp.concatenate(
        [interleave(whh0, wih1),        # rows multiplied by h0
         interleave(z_h, whh1)],        # rows multiplied by h1
        axis=0)                                          # (2H, 8H)
    w0c = interleave(wih0, z_i)                          # (I, 8H)
    b0c = interleave(b0, z_1)                            # (1, 8H)
    b1c = interleave(z_1, b1)                            # (1, 8H)

    def pad_w(a):
        return jnp.pad(a, ((0, 0), (0, width - a.shape[1])))

    packed = jnp.concatenate(
        [w_comb, pad_w(fcw1), pad_w(fcw2), w0c, b0c, b1c, pad_w(fcb1), pad_w(fcb2)],
        axis=0)
    pad_rows = (-packed.shape[0]) % 8
    if pad_rows:
        packed = jnp.pad(packed, ((0, pad_rows), (0, 0)))
    return packed


@jax.jit
def stock_lstm_forward(x, packed_params):
    """x: (B, T, input_size) f32, packed_params from prepare_params -> (B,) f32."""
    B = x.shape[0]
    vmem = pl.BlockSpec(memory_space=pltpu.MemorySpace.VMEM)
    out = pl.pallas_call(
        _stock_lstm_kernel,
        out_shape=jax.ShapeDtypeStruct((B, 1), jnp.float32),
        in_specs=[vmem, vmem],
        out_specs=vmem,
    )(x, packed_params)
    return jnp.squeeze(out)   # matches PyTorch out.squeeze()


def init_params(key, input_size=2, hidden_size=32):
    """Deterministic synthetic init (PyTorch-style U(-1/sqrt(fan), 1/sqrt(fan)))."""
    H = hidden_size
    ks = jax.random.split(key, 12)
    klstm = 1.0 / np.sqrt(H)

    def u(k, shape, bound):
        return jax.random.uniform(k, shape, jnp.float32, -bound, bound)

    # Weights stored transposed (in_dim, 4H) for y = x @ W; gate order [i f g o].
    wih0 = u(ks[0], (input_size, 4 * H), klstm)
    whh0 = u(ks[1], (H, 4 * H), klstm)
    b0 = u(ks[2], (1, 4 * H), klstm) + u(ks[3], (1, 4 * H), klstm)   # b_ih + b_hh
    wih1 = u(ks[4], (H, 4 * H), klstm)
    whh1 = u(ks[5], (H, 4 * H), klstm)
    b1 = u(ks[6], (1, 4 * H), klstm) + u(ks[7], (1, 4 * H), klstm)
    kfc1 = 1.0 / np.sqrt(H)
    kfc2 = 1.0 / np.sqrt(FC_HIDDEN)
    fcw1 = u(ks[8], (H, FC_HIDDEN), kfc1)
    fcb1 = u(ks[9], (1, FC_HIDDEN), kfc1)
    fcw2 = u(ks[10], (FC_HIDDEN, 1), kfc2)
    fcb2 = u(ks[11], (1, 1), kfc2)
    return (wih0, whh0, b0, wih1, whh1, b1, fcw1, fcb1, fcw2, fcb2)


def _reference_forward(x, params):
    """Pure-JAX reference of the same math (eval-mode PyTorch LSTM semantics)."""
    wih0, whh0, b0, wih1, whh1, b1, fcw1, fcb1, fcw2, fcb2 = params
    B, T, _ = x.shape
    H = whh0.shape[0]

    def cell(x_t, h, c, wih, whh, b):
        gates = x_t @ wih + h @ whh + b
        i = jax.nn.sigmoid(gates[:, 0 * H:1 * H])
        f = jax.nn.sigmoid(gates[:, 1 * H:2 * H])
        g = jnp.tanh(gates[:, 2 * H:3 * H])
        o = jax.nn.sigmoid(gates[:, 3 * H:4 * H])
        c = f * c + i * g
        h = o * jnp.tanh(c)
        return h, c

    h0 = c0 = h1 = c1 = jnp.zeros((B, H), jnp.float32)
    for t in range(T):
        h0, c0 = cell(x[:, t, :], h0, c0, wih0, whh0, b0)
        h1, c1 = cell(h0, h1, c1, wih1, whh1, b1)   # dropout(p=0.1) identity in eval
    hid = jnp.maximum(h1 @ fcw1 + fcb1, 0.0)
    return jnp.squeeze(hid @ fcw2 + fcb2)


if __name__ == "__main__":
    key = jax.random.PRNGKey(0)
    k_x, k_p = jax.random.split(key)

    batch, seq, input_size, hidden = 2, 8, 2, 32
    x = jax.random.normal(k_x, (batch, seq, input_size), jnp.float32)
    params = init_params(k_p, input_size=input_size, hidden_size=hidden)

    # One-time parameter packing (outside the per-call / jitted path).
    packed = prepare_params(params, input_size=input_size, hidden_size=hidden)

    out = stock_lstm_forward(x, packed)
    out = jax.block_until_ready(out)

    ref = _reference_forward(x, params)
    # Slightly loose rtol: the fused (2H,8H) matmul / folded biases legitimately
    # reassociate the f32 accumulation order vs. the reference.
    np.testing.assert_allclose(np.asarray(out), np.asarray(ref), rtol=2e-4, atol=1e-5)

    print("KERNEL_OK")
</pallas_src>

<mosaic_0001>
module attributes {stable_mosaic.version = 11 : i64} {
  func.func @_stock_lstm_kernel(%arg0: memref<2x8x2xf32, #tpu.memory_space<vmem>>, %arg1: memref<120x256xf32, #tpu.memory_space<vmem>>, %arg2: memref<2x1xf32, #tpu.memory_space<vmem>>) attributes {dimension_semantics = [], scalar_prefetch = 0 : i64, scratch_operands = 0 : i64, tpu.core_type = #tpu.core_type<tc>} {
    %c0 = arith.constant 0 : index
    %c0_0 = arith.constant 0 : index
    %0 = vector.load %arg1[%c0, %c0_0] : memref<120x256xf32, #tpu.memory_space<vmem>>, vector<64x256xf32>
    %c64 = arith.constant 64 : index
    %c0_1 = arith.constant 0 : index
    %1 = vector.load %arg1[%c64, %c0_1] : memref<120x256xf32, #tpu.memory_space<vmem>>, vector<32x16xf32>
    %c96 = arith.constant 96 : index
    %c0_2 = arith.constant 0 : index
    %2 = vector.load %arg1[%c96, %c0_2] : memref<120x256xf32, #tpu.memory_space<vmem>>, vector<16x1xf32>
    %c112 = arith.constant 112 : index
    %c0_3 = arith.constant 0 : index
    %3 = vector.load %arg1[%c112, %c0_3] : memref<120x256xf32, #tpu.memory_space<vmem>>, vector<2x256xf32>
    %c114 = arith.constant 114 : index
    %c0_4 = arith.constant 0 : index
    %4 = vector.load %arg1[%c114, %c0_4] : memref<120x256xf32, #tpu.memory_space<vmem>>, vector<1x256xf32>
    %c115 = arith.constant 115 : index
    %c0_5 = arith.constant 0 : index
    %5 = vector.load %arg1[%c115, %c0_5] : memref<120x256xf32, #tpu.memory_space<vmem>>, vector<1x256xf32>
    %c116 = arith.constant 116 : index
    %c0_6 = arith.constant 0 : index
    %6 = vector.load %arg1[%c116, %c0_6] : memref<120x256xf32, #tpu.memory_space<vmem>>, vector<1x16xf32>
    %c117 = arith.constant 117 : index
    %c0_7 = arith.constant 0 : index
    %7 = vector.load %arg1[%c117, %c0_7] : memref<120x256xf32, #tpu.memory_space<vmem>>, vector<1x1xf32>
    %c0_8 = arith.constant 0 : index
    %c0_9 = arith.constant 0 : index
    %c0_10 = arith.constant 0 : index
    %8 = vector.load %arg0[%c0_8, %c0_9, %c0_10] : memref<2x8x2xf32, #tpu.memory_space<vmem>>, vector<2x8x2xf32>
    %9 = vector.extract_strided_slice %8 {offsets = [0, 0, 0], sizes = [2, 8, 1], strides = [1, 1, 1]} : vector<2x8x2xf32> to vector<2x8x1xf32>
    %10 = vector.extract_strided_slice %3 {offsets = [0, 0], sizes = [1, 256], strides = [1, 1]} : vector<2x256xf32> to vector<1x256xf32>
    %11 = vector.shape_cast %10 : vector<1x256xf32> to vector<1x1x256xf32>
    %12 = vector.broadcast %9 : vector<2x8x1xf32> to vector<2x8x256xf32>
    %13 = vector.broadcast %11 : vector<1x1x256xf32> to vector<2x8x256xf32>
    %14 = arith.mulf %12, %13 : vector<2x8x256xf32>
    %15 = vector.shape_cast %4 : vector<1x256xf32> to vector<1x1x256xf32>
    %16 = vector.broadcast %15 : vector<1x1x256xf32> to vector<2x8x256xf32>
    %17 = arith.addf %16, %14 : vector<2x8x256xf32>
    %18 = vector.extract_strided_slice %8 {offsets = [0, 0, 1], sizes = [2, 8, 1], strides = [1, 1, 1]} : vector<2x8x2xf32> to vector<2x8x1xf32>
    %19 = vector.extract_strided_slice %3 {offsets = [1, 0], sizes = [1, 256], strides = [1, 1]} : vector<2x256xf32> to vector<1x256xf32>
    %20 = vector.shape_cast %19 : vector<1x256xf32> to vector<1x1x256xf32>
    %21 = vector.broadcast %18 : vector<2x8x1xf32> to vector<2x8x256xf32>
    %22 = vector.broadcast %20 : vector<1x1x256xf32> to vector<2x8x256xf32>
    %23 = arith.mulf %21, %22 : vector<2x8x256xf32>
    %24 = arith.addf %17, %23 : vector<2x8x256xf32>
    %cst = arith.constant 0.000000e+00 : f32
    %25 = vector.broadcast %cst : f32 to vector<2x64xf32>
    %cst_11 = arith.constant 0.000000e+00 : f32
    %26 = vector.broadcast %cst_11 : f32 to vector<2x64xf32>
    %cst_12 = arith.constant dense<0.000000e+00> : vector<2x256xf32>
    %27 = tpu.matmul %25, %0, %cst_12 {dimension_numbers = #tpu.dot_dimension_numbers<[1], [0], [0], [1], [0, 0, 1, 1], [], []>} : vector<2x64xf32>, vector<64x256xf32>, vector<2x256xf32> -> vector<2x256xf32>
    %28 = vector.extract_strided_slice %24 {offsets = [0, 0, 0], sizes = [2, 1, 256], strides = [1, 1, 1]} : vector<2x8x256xf32> to vector<2x1x256xf32>
    %29 = vector.shape_cast %28 : vector<2x1x256xf32> to vector<2x256xf32>
    %30 = arith.addf %27, %29 : vector<2x256xf32>
    %31 = arith.negf %30 : vector<2x256xf32>
    %32 = math.exp %31 : vector<2x256xf32>
    %cst_13 = arith.constant 1.000000e+00 : f32
    %33 = vector.broadcast %cst_13 : f32 to vector<2x256xf32>
    %34 = arith.addf %33, %32 : vector<2x256xf32>
    %35 = arith.divf %33, %34 : vector<2x256xf32>
    %36 = math.tanh %30 : vector<2x256xf32>
    %37 = vector.extract_strided_slice %35 {offsets = [0, 0], sizes = [2, 64], strides = [1, 1]} : vector<2x256xf32> to vector<2x64xf32>
    %38 = vector.extract_strided_slice %35 {offsets = [0, 64], sizes = [2, 64], strides = [1, 1]} : vector<2x256xf32> to vector<2x64xf32>
    %39 = vector.extract_strided_slice %36 {offsets = [0, 128], sizes = [2, 64], strides = [1, 1]} : vector<2x256xf32> to vector<2x64xf32>
    %40 = vector.extract_strided_slice %35 {offsets = [0, 192], sizes = [2, 64], strides = [1, 1]} : vector<2x256xf32> to vector<2x64xf32>
    %41 = arith.mulf %38, %26 : vector<2x64xf32>
    %42 = arith.mulf %37, %39 : vector<2x64xf32>
    %43 = arith.addf %41, %42 : vector<2x64xf32>
    %44 = math.tanh %43 : vector<2x64xf32>
    %45 = arith.mulf %40, %44 : vector<2x64xf32>
    %cst_14 = arith.constant dense<0.000000e+00> : vector<2x256xf32>
    %46 = tpu.matmul %45, %0, %cst_14 {dimension_numbers = #tpu.dot_dimension_numbers<[1], [0], [0], [1], [0, 0, 1, 1], [], []>} : vector<2x64xf32>, vector<64x256xf32>, vector<2x256xf32> -> vector<2x256xf32>
    %47 = vector.extract_strided_slice %24 {offsets = [0, 1, 0], sizes = [2, 1, 256], strides = [1, 1, 1]} : vector<2x8x256xf32> to vector<2x1x256xf32>
    %48 = vector.shape_cast %47 : vector<2x1x256xf32> to vector<2x256xf32>
    %49 = vector.broadcast %5 : vector<1x256xf32> to vector<2x256xf32>
    %50 = arith.addf %48, %49 : vector<2x256xf32>
    %51 = arith.addf %46, %50 : vector<2x256xf32>
    %52 = arith.negf %51 : vector<2x256xf32>
    %53 = math.exp %52 : vector<2x256xf32>
    %cst_15 = arith.constant 1.000000e+00 : f32
    %54 = vector.broadcast %cst_15 : f32 to vector<2x256xf32>
    %55 = arith.addf %54, %53 : vector<2x256xf32>
    %56 = arith.divf %54, %55 : vector<2x256xf32>
    %57 = math.tanh %51 : vector<2x256xf32>
    %58 = vector.extract_strided_slice %56 {offsets = [0, 0], sizes = [2, 64], strides = [1, 1]} : vector<2x256xf32> to vector<2x64xf32>
    %59 = vector.extract_strided_slice %56 {offsets = [0, 64], sizes = [2, 64], strides = [1, 1]} : vector<2x256xf32> to vector<2x64xf32>
    %60 = vector.extract_strided_slice %57 {offsets = [0, 128], sizes = [2, 64], strides = [1, 1]} : vector<2x256xf32> to vector<2x64xf32>
    %61 = vector.extract_strided_slice %56 {offsets = [0, 192], sizes = [2, 64], strides = [1, 1]} : vector<2x256xf32> to vector<2x64xf32>
    %62 = arith.mulf %59, %43 : vector<2x64xf32>
    %63 = arith.mulf %58, %60 : vector<2x64xf32>
    %64 = arith.addf %62, %63 : vector<2x64xf32>
    %65 = math.tanh %64 : vector<2x64xf32>
    %66 = arith.mulf %61, %65 : vector<2x64xf32>
    %cst_16 = arith.constant dense<0.000000e+00> : vector<2x256xf32>
    %67 = tpu.matmul %66, %0, %cst_16 {dimension_numbers = #tpu.dot_dimension_numbers<[1], [0], [0], [1], [0, 0, 1, 1], [], []>} : vector<2x64xf32>, vector<64x256xf32>, vector<2x256xf32> -> vector<2x256xf32>
    %68 = vector.extract_strided_slice %24 {offsets = [0, 2, 0], sizes = [2, 1, 256], strides = [1, 1, 1]} : vector<2x8x256xf32> to vector<2x1x256xf32>
    %69 = vector.shape_cast %68 : vector<2x1x256xf32> to vector<2x256xf32>
    %70 = vector.broadcast %5 : vector<1x256xf32> to vector<2x256xf32>
    %71 = arith.addf %69, %70 : vector<2x256xf32>
    %72 = arith.addf %67, %71 : vector<2x256xf32>
    %73 = arith.negf %72 : vector<2x256xf32>
    %74 = math.exp %73 : vector<2x256xf32>
    %cst_17 = arith.constant 1.000000e+00 : f32
    %75 = vector.broadcast %cst_17 : f32 to vector<2x256xf32>
    %76 = arith.addf %75, %74 : vector<2x256xf32>
    %77 = arith.divf %75, %76 : vector<2x256xf32>
    %78 = math.tanh %72 : vector<2x256xf32>
    %79 = vector.extract_strided_slice %77 {offsets = [0, 0], sizes = [2, 64], strides = [1, 1]} : vector<2x256xf32> to vector<2x64xf32>
    %80 = vector.extract_strided_slice %77 {offsets = [0, 64], sizes = [2, 64], strides = [1, 1]} : vector<2x256xf32> to vector<2x64xf32>
    %81 = vector.extract_strided_slice %78 {offsets = [0, 128], sizes = [2, 64], strides = [1, 1]} : vector<2x256xf32> to vector<2x64xf32>
    %82 = vector.extract_strided_slice %77 {offsets = [0, 192], sizes = [2, 64], strides = [1, 1]} : vector<2x256xf32> to vector<2x64xf32>
    %83 = arith.mulf %80, %64 : vector<2x64xf32>
    %84 = arith.mulf %79, %81 : vector<2x64xf32>
    %85 = arith.addf %83, %84 : vector<2x64xf32>
    %86 = math.tanh %85 : vector<2x64xf32>
    %87 = arith.mulf %82, %86 : vector<2x64xf32>
    %cst_18 = arith.constant dense<0.000000e+00> : vector<2x256xf32>
    %88 = tpu.matmul %87, %0, %cst_18 {dimension_numbers = #tpu.dot_dimension_numbers<[1], [0], [0], [1], [0, 0, 1, 1], [], []>} : vector<2x64xf32>, vector<64x256xf32>, vector<2x256xf32> -> vector<2x256xf32>
    %89 = vector.extract_strided_slice %24 {offsets = [0, 3, 0], sizes = [2, 1, 256], strides = [1, 1, 1]} : vector<2x8x256xf32> to vector<2x1x256xf32>
    %90 = vector.shape_cast %89 : vector<2x1x256xf32> to vector<2x256xf32>
    %91 = vector.broadcast %5 : vector<1x256xf32> to vector<2x256xf32>
    %92 = arith.addf %90, %91 : vector<2x256xf32>
    %93 = arith.addf %88, %92 : vector<2x256xf32>
    %94 = arith.negf %93 : vector<2x256xf32>
    %95 = math.exp %94 : vector<2x256xf32>
    %cst_19 = arith.constant 1.000000e+00 : f32
    %96 = vector.broadcast %cst_19 : f32 to vector<2x256xf32>
    %97 = arith.addf %96, %95 : vector<2x256xf32>
    %98 = arith.divf %96, %97 : vector<2x256xf32>
    %99 = math.tanh %93 : vector<2x256xf32>
    %100 = vector.extract_strided_slice %98 {offsets = [0, 0], sizes = [2, 64], strides = [1, 1]} : vector<2x256xf32> to vector<2x64xf32>
    %101 = vector.extract_strided_slice %98 {offsets = [0, 64], sizes = [2, 64], strides = [1, 1]} : vector<2x256xf32> to vector<2x64xf32>
    %102 = vector.extract_strided_slice %99 {offsets = [0, 128], sizes = [2, 64], strides = [1, 1]} : vector<2x256xf32> to vector<2x64xf32>
    %103 = vector.extract_strided_slice %98 {offsets = [0, 192], sizes = [2, 64], strides = [1, 1]} : vector<2x256xf32> to vector<2x64xf32>
    %104 = arith.mulf %101, %85 : vector<2x64xf32>
    %105 = arith.mulf %100, %102 : vector<2x64xf32>
    %106 = arith.addf %104, %105 : vector<2x64xf32>
    %107 = math.tanh %106 : vector<2x64xf32>
    %108 = arith.mulf %103, %107 : vector<2x64xf32>
    %cst_20 = arith.constant dense<0.000000e+00> : vector<2x256xf32>
    %109 = tpu.matmul %108, %0, %cst_20 {dimension_numbers = #tpu.dot_dimension_numbers<[1], [0], [0], [1], [0, 0, 1, 1], [], []>} : vector<2x64xf32>, vector<64x256xf32>, vector<2x256xf32> -> vector<2x256xf32>
    %110 = vector.extract_strided_slice %24 {offsets = [0, 4, 0], sizes = [2, 1, 256], strides = [1, 1, 1]} : vector<2x8x256xf32> to vector<2x1x256xf32>
    %111 = vector.shape_cast %110 : vector<2x1x256xf32> to vector<2x256xf32>
    %112 = vector.broadcast %5 : vector<1x256xf32> to vector<2x256xf32>
    %113 = arith.addf %111, %112 : vector<2x256xf32>
    %114 = arith.addf %109, %113 : vector<2x256xf32>
    %115 = arith.negf %114 : vector<2x256xf32>
    %116 = math.exp %115 : vector<2x256xf32>
    %cst_21 = arith.constant 1.000000e+00 : f32
    %117 = vector.broadcast %cst_21 : f32 to vector<2x256xf32>
    %118 = arith.addf %117, %116 : vector<2x256xf32>
    %119 = arith.divf %117, %118 : vector<2x256xf32>
    %120 = math.tanh %114 : vector<2x256xf32>
    %121 = vector.extract_strided_slice %119 {offsets = [0, 0], sizes = [2, 64], strides = [1, 1]} : vector<2x256xf32> to vector<2x64xf32>
    %122 = vector.extract_strided_slice %119 {offsets = [0, 64], sizes = [2, 64], strides = [1, 1]} : vector<2x256xf32> to vector<2x64xf32>
    %123 = vector.extract_strided_slice %120 {offsets = [0, 128], sizes = [2, 64], strides = [1, 1]} : vector<2x256xf32> to vector<2x64xf32>
    %124 = vector.extract_strided_slice %119 {offsets = [0, 192], sizes = [2, 64], strides = [1, 1]} : vector<2x256xf32> to vector<2x64xf32>
    %125 = arith.mulf %122, %106 : vector<2x64xf32>
    %126 = arith.mulf %121, %123 : vector<2x64xf32>
    %127 = arith.addf %125, %126 : vector<2x64xf32>
    %128 = math.tanh %127 : vector<2x64xf32>
    %129 = arith.mulf %124, %128 : vector<2x64xf32>
    %cst_22 = arith.constant dense<0.000000e+00> : vector<2x256xf32>
    %130 = tpu.matmul %129, %0, %cst_22 {dimension_numbers = #tpu.dot_dimension_numbers<[1], [0], [0], [1], [0, 0, 1, 1], [], []>} : vector<2x64xf32>, vector<64x256xf32>, vector<2x256xf32> -> vector<2x256xf32>
    %131 = vector.extract_strided_slice %24 {offsets = [0, 5, 0], sizes = [2, 1, 256], strides = [1, 1, 1]} : vector<2x8x256xf32> to vector<2x1x256xf32>
    %132 = vector.shape_cast %131 : vector<2x1x256xf32> to vector<2x256xf32>
    %133 = vector.broadcast %5 : vector<1x256xf32> to vector<2x256xf32>
    %134 = arith.addf %132, %133 : vector<2x256xf32>
    %135 = arith.addf %130, %134 : vector<2x256xf32>
    %136 = arith.negf %135 : vector<2x256xf32>
    %137 = math.exp %136 : vector<2x256xf32>
    %cst_23 = arith.constant 1.000000e+00 : f32
    %138 = vector.broadcast %cst_23 : f32 to vector<2x256xf32>
    %139 = arith.addf %138, %137 : vector<2x256xf32>
    %140 = arith.divf %138, %139 : vector<2x256xf32>
    %141 = math.tanh %135 : vector<2x256xf32>
    %142 = vector.extract_strided_slice %140 {offsets = [0, 0], sizes = [2, 64], strides = [1, 1]} : vector<2x256xf32> to vector<2x64xf32>
    %143 = vector.extract_strided_slice %140 {offsets = [0, 64], sizes = [2, 64], strides = [1, 1]} : vector<2x256xf32> to vector<2x64xf32>
    %144 = vector.extract_strided_slice %141 {offsets = [0, 128], sizes = [2, 64], strides = [1, 1]} : vector<2x256xf32> to vector<2x64xf32>
    %145 = vector.extract_strided_slice %140 {offsets = [0, 192], sizes = [2, 64], strides = [1, 1]} : vector<2x256xf32> to vector<2x64xf32>
    %146 = arith.mulf %143, %127 : vector<2x64xf32>
    %147 = arith.mulf %142, %144 : vector<2x64xf32>
    %148 = arith.addf %146, %147 : vector<2x64xf32>
    %149 = math.tanh %148 : vector<2x64xf32>
    %150 = arith.mulf %145, %149 : vector<2x64xf32>
    %cst_24 = arith.constant dense<0.000000e+00> : vector<2x256xf32>
    %151 = tpu.matmul %150, %0, %cst_24 {dimension_numbers = #tpu.dot_dimension_numbers<[1], [0], [0], [1], [0, 0, 1, 1], [], []>} : vector<2x64xf32>, vector<64x256xf32>, vector<2x256xf32> -> vector<2x256xf32>
    %152 = vector.extract_strided_slice %24 {offsets = [0, 6, 0], sizes = [2, 1, 256], strides = [1, 1, 1]} : vector<2x8x256xf32> to vector<2x1x256xf32>
    %153 = vector.shape_cast %152 : vector<2x1x256xf32> to vector<2x256xf32>
    %154 = vector.broadcast %5 : vector<1x256xf32> to vector<2x256xf32>
    %155 = arith.addf %153, %154 : vector<2x256xf32>
    %156 = arith.addf %151, %155 : vector<2x256xf32>
    %157 = arith.negf %156 : vector<2x256xf32>
    %158 = math.exp %157 : vector<2x256xf32>
    %cst_25 = arith.constant 1.000000e+00 : f32
    %159 = vector.broadcast %cst_25 : f32 to vector<2x256xf32>
    %160 = arith.addf %159, %158 : vector<2x256xf32>
    %161 = arith.divf %159, %160 : vector<2x256xf32>
    %162 = math.tanh %156 : vector<2x256xf32>
    %163 = vector.extract_strided_slice %161 {offsets = [0, 0], sizes = [2, 64], strides = [1, 1]} : vector<2x256xf32> to vector<2x64xf32>
    %164 = vector.extract_strided_slice %161 {offsets = [0, 64], sizes = [2, 64], strides = [1, 1]} : vector<2x256xf32> to vector<2x64xf32>
    %165 = vector.extract_strided_slice %162 {offsets = [0, 128], sizes = [2, 64], strides = [1, 1]} : vector<2x256xf32> to vector<2x64xf32>
    %166 = vector.extract_strided_slice %161 {offsets = [0, 192], sizes = [2, 64], strides = [1, 1]} : vector<2x256xf32> to vector<2x64xf32>
    %167 = arith.mulf %164, %148 : vector<2x64xf32>
    %168 = arith.mulf %163, %165 : vector<2x64xf32>
    %169 = arith.addf %167, %168 : vector<2x64xf32>
    %170 = math.tanh %169 : vector<2x64xf32>
    %171 = arith.mulf %166, %170 : vector<2x64xf32>
    %cst_26 = arith.constant dense<0.000000e+00> : vector<2x256xf32>
    %172 = tpu.matmul %171, %0, %cst_26 {dimension_numbers = #tpu.dot_dimension_numbers<[1], [0], [0], [1], [0, 0, 1, 1], [], []>} : vector<2x64xf32>, vector<64x256xf32>, vector<2x256xf32> -> vector<2x256xf32>
    %173 = vector.extract_strided_slice %24 {offsets = [0, 7, 0], sizes = [2, 1, 256], strides = [1, 1, 1]} : vector<2x8x256xf32> to vector<2x1x256xf32>
    %174 = vector.shape_cast %173 : vector<2x1x256xf32> to vector<2x256xf32>
    %175 = vector.broadcast %5 : vector<1x256xf32> to vector<2x256xf32>
    %176 = arith.addf %174, %175 : vector<2x256xf32>
    %177 = arith.addf %172, %176 : vector<2x256xf32>
    %178 = arith.negf %177 : vector<2x256xf32>
    %179 = math.exp %178 : vector<2x256xf32>
    %cst_27 = arith.constant 1.000000e+00 : f32
    %180 = vector.broadcast %cst_27 : f32 to vector<2x256xf32>
    %181 = arith.addf %180, %179 : vector<2x256xf32>
    %182 = arith.divf %180, %181 : vector<2x256xf32>
    %183 = math.tanh %177 : vector<2x256xf32>
    %184 = vector.extract_strided_slice %182 {offsets = [0, 0], sizes = [2, 64], strides = [1, 1]} : vector<2x256xf32> to vector<2x64xf32>
    %185 = vector.extract_strided_slice %182 {offsets = [0, 64], sizes = [2, 64], strides = [1, 1]} : vector<2x256xf32> to vector<2x64xf32>
    %186 = vector.extract_strided_slice %183 {offsets = [0, 128], sizes = [2, 64], strides = [1, 1]} : vector<2x256xf32> to vector<2x64xf32>
    %187 = vector.extract_strided_slice %182 {offsets = [0, 192], sizes = [2, 64], strides = [1, 1]} : vector<2x256xf32> to vector<2x64xf32>
    %188 = arith.mulf %185, %169 : vector<2x64xf32>
    %189 = arith.mulf %184, %186 : vector<2x64xf32>
    %190 = arith.addf %188, %189 : vector<2x64xf32>
    %191 = math.tanh %190 : vector<2x64xf32>
    %192 = arith.mulf %187, %191 : vector<2x64xf32>
    %cst_28 = arith.constant dense<0.000000e+00> : vector<2x256xf32>
    %193 = tpu.matmul %192, %0, %cst_28 {dimension_numbers = #tpu.dot_dimension_numbers<[1], [0], [0], [1], [0, 0, 1, 1], [], []>} : vector<2x64xf32>, vector<64x256xf32>, vector<2x256xf32> -> vector<2x256xf32>
    %194 = vector.broadcast %5 : vector<1x256xf32> to vector<2x256xf32>
    %195 = arith.addf %193, %194 : vector<2x256xf32>
    %196 = arith.negf %195 : vector<2x256xf32>
    %197 = math.exp %196 : vector<2x256xf32>
    %cst_29 = arith.constant 1.000000e+00 : f32
    %198 = vector.broadcast %cst_29 : f32 to vector<2x256xf32>
    %199 = arith.addf %198, %197 : vector<2x256xf32>
    %200 = arith.divf %198, %199 : vector<2x256xf32>
    %201 = math.tanh %195 : vector<2x256xf32>
    %202 = vector.extract_strided_slice %200 {offsets = [0, 0], sizes = [2, 64], strides = [1, 1]} : vector<2x256xf32> to vector<2x64xf32>
    %203 = vector.extract_strided_slice %200 {offsets = [0, 64], sizes = [2, 64], strides = [1, 1]} : vector<2x256xf32> to vector<2x64xf32>
    %204 = vector.extract_strided_slice %201 {offsets = [0, 128], sizes = [2, 64], strides = [1, 1]} : vector<2x256xf32> to vector<2x64xf32>
    %205 = vector.extract_strided_slice %200 {offsets = [0, 192], sizes = [2, 64], strides = [1, 1]} : vector<2x256xf32> to vector<2x64xf32>
    %206 = arith.mulf %203, %190 : vector<2x64xf32>
    %207 = arith.mulf %202, %204 : vector<2x64xf32>
    %208 = arith.addf %206, %207 : vector<2x64xf32>
    %209 = math.tanh %208 : vector<2x64xf32>
    %210 = arith.mulf %205, %209 : vector<2x64xf32>
    %211 = vector.extract_strided_slice %210 {offsets = [0, 32], sizes = [2, 32], strides = [1, 1]} : vector<2x64xf32> to vector<2x32xf32>
    %cst_30 = arith.constant dense<0.000000e+00> : vector<2x16xf32>
    %212 = tpu.matmul %211, %1, %cst_30 {dimension_numbers = #tpu.dot_dimension_numbers<[1], [0], [0], [1], [0, 0, 1, 1], [], []>} : vector<2x32xf32>, vector<32x16xf32>, vector<2x16xf32> -> vector<2x16xf32>
    %213 = vector.broadcast %6 : vector<1x16xf32> to vector<2x16xf32>
    %214 = arith.addf %212, %213 : vector<2x16xf32>
    %cst_31 = arith.constant 0.000000e+00 : f32
    %215 = vector.broadcast %cst_31 : f32 to vector<2x16xf32>
    %216 = arith.maximumf %214, %215 : vector<2x16xf32>
    %cst_32 = arith.constant dense<0.000000e+00> : vector<2x1xf32>
    %217 = tpu.matmul %216, %2, %cst_32 {dimension_numbers = #tpu.dot_dimension_numbers<[1], [0], [0], [1], [0, 0, 1, 1], [], []>} : vector<2x16xf32>, vector<16x1xf32>, vector<2x1xf32> -> vector<2x1xf32>
    %218 = vector.broadcast %7 : vector<1x1xf32> to vector<2x1xf32>
    %219 = arith.addf %217, %218 : vector<2x1xf32>
    %c0_33 = arith.constant 0 : index
    %c0_34 = arith.constant 0 : index
    %220 = vector.load %arg2[%c0_33, %c0_34] : memref<2x1xf32, #tpu.memory_space<vmem>>, vector<2x1xf32>
    tpu.vector_store %arg2[%c0_33, %c0_34], %219 {strides = array<i32>} : memref<2x1xf32, #tpu.memory_space<vmem>>, vector<2x1xf32>,
    return
  }
}

</mosaic_0001>

<bundles_post_ra>
// kernel: stock_lstm_forward.1
= control target key start
LH: loop header
LB: loop body
LE: loop exit
PB: predicated region body
PF: predicated region fallthrough
CT: control target
= control target key end

     0   :  { %7 = vsyncpa [#allocation3], 0  ;;  %s1437_s9 = smov [#allocation2]   ;;  %s1768_s0 = inlined_call_operand.vmem [shape: f32[2,8,2], index: 0, kind: input, shape index: {}]   ;;  %s1769_s1 = inlined_call_operand.hbm [shape: f32[120,256], index: 1, kind: input, shape index: {}]   ;;  %s1770_s2 = inlined_call_operand.vmem [shape: f32[2,1], index: 2, kind: output, shape index: {}]  }
   0x1   :  { %s15_s10 = sshll.u32 %s1437_s9, 4  ;;  %s16_s10 = int_to_ptr.vmem [resolvable:$true] %s15_s10 }
   0x2   :  { %s1423_s11 = scalar_lea.vmem %s16_s10, 3840  ;;  %p1428_p1 = scmp.lt.s32.totalorder %s16_s10, %s16_s10 }
   0x3   :  { %p1424_p0 = scmp.ne.s32.totalorder %s16_s10, %s1423_s11  ;;  %p1429_p2 = scmp.lt.s32.totalorder %s1423_s11, %s1423_s11 }
   0x5   :  { %p1430_p3 = por %p1429_p2, %p1428_p1 }
   0x7   :  { %p1431_p4 = pnand %p1430_p3, %p1424_p0 }
   0x9   :  { %1434 = shalt.err (!%p1431_p4)
}
   0xa   :  { %s1438_s12 = smov 256   ;;  %s1439_s13 = smov 16  }
   0xb   :  { %21 = dma.hbm_to_vmem [thread:$0]  %s1769_s1, 3840, %s16_s10, [#allocation3], %s1438_s12, %s1438_s12, %s1439_s13  }
   0xc   :  { %1435 = dma.done.wait [#allocation3], 3840  }
   0xd   :  { %1436 = vsyncadd [#allocation3], 4294963456  ;;  %v1440_v0 = vmov 0.0   ;;  %v1441_v1 = vmov 0   ;;  %v1442_v2 = vmov 1   ;;  %v1467_v3 = vld [vmem:[#allocation2 + $0x78] sm:$0xff]  ;;  %v67_v21 = vlaneseq }
   0xe   :  { %197 = vmatprep.mubr.f32.mxu0 %v1440_v0  ;;  %1304 = vset.pattern.permute.xlu0 %v1441_v1  ;;  %v1469_v4 = vld [vmem:[#allocation2 + $0x70] sm:$0xff]  ;;  %v1471_v5 = vld [vmem:[#allocation2 + $0x68] sm:$0xff]  ;;  %v1474_v6 = vld [vmem:[#allocation2 + $0x60] sm:$0xff]  ;;  %vm123_vm0 = vcmask 1041409   ;;  %vm129_vm1 = vcmask 523264   ;;  %vm1444_vm2 = vmmov 0  }
   0xf   :  { %1305 = vset.pattern.permute.xlu1 %v1442_v2  ;;  %320 = vmatprep.mubr.f32.mxu1 %v1440_v0  ;;  %v1478_v7 = vld [vmem:[#allocation2 + $0x58] sm:$0xff]  ;;  %v1482_v8 = vld [vmem:[#allocation2 + $0x50] sm:$0xff]  ;;  %v1486_v9 = vld [vmem:[#allocation2 + $0x48] sm:$0xff]  ;;  %v68_v22 = vshrl.u32 %v67_v21, 7  ;;  %s1445_s19 = smov 32   ;;  %vm1086_vm3 = vcmask 261120  }
  0x10   :  { %149 = vmatprep.subr.mxu0 %v1467_v3  ;;  %272 = vmatprep.subr.mxu1 %v1467_v3  ;;  %v1490_v10 = vld [vmem:[#allocation2 + $0x40] sm:$0xff]  ;;  %v56_v11 = vld [vmem:[%s1768_s0 + $0x8] sm:$0xff]  ;;  %v1497_v12 = vld [vmem:[#allocation2 + $0x38] sm:$0xff]  ;;  %vm1160_vm4 = vcmask 130048   ;;  %vm1234_vm5 = vcmask 1024  }
  0x11   :  { %150 = vmatpush1.msra.mxu0 %v1469_v4  ;;  %273 = vmatpush1.msra.mxu1 %v1469_v4  ;;  %v1500_v13 = vld [vmem:[#allocation2 + $0x30] sm:$0xff]  ;;  %v55_v14 = vld [vmem:[%s1768_s0] sm:$0xff]  ;;  %v1506_v15 = vld [vmem:[#allocation2 + $0x28] sm:$0xff]  ;;  %v69_v23 = vsub.s32 0, %v68_v22  ;;  %v86_v24 = vsub.s32 1, %v68_v22  ;;  %s1443_s0 = smov 64  }
  0x12   :  { %151 = vmatprep.subr.mxu0 %v1471_v5  ;;  %274 = vmatprep.subr.mxu1 %v1471_v5  ;;  %v1509_v16 = vld [vmem:[#allocation2 + $0x20] sm:$0xff]  ;;  %v1513_v17 = vld [vmem:[#allocation2 + $0x18] sm:$0xff]  ;;  %v1516_v18 = vld [vmem:[#allocation2 + $0x10] sm:$0xff] }
  0x13   :  { %152 = vmatpush1.msra.mxu0 %v1474_v6  ;;  %275 = vmatpush1.msra.mxu1 %v1474_v6  ;;  %v1519_v19 = vld [vmem:[#allocation2 + $0x8] sm:$0xff]  ;;  %v1523_v20 = vld [vmem:[#allocation2] sm:$0xff] }
  0x14   :  { %153 = vmatprep.subr.mxu0 %v1478_v7  ;;  %276 = vmatprep.subr.mxu1 %v1478_v7  ;;  %v47_v25 = vld [vmem:[#allocation2 + $0xe0] sm:$0x3]  ;;  %v48_v26 = vld [vmem:[#allocation2 + $0xe8] sm:$0x3] }
  0x15   :  { %154 = vmatpush1.msra.mxu0 %v1482_v8  ;;  %64 = vperm.xlu0 %1304, %v56_v11   ;;  %v50_v27 = vld [vmem:[#allocation2 + $0xe2] ss:$8 sm:$0x3]  ;;  %v70_v28 = vrot.slane %v47_v25, %v69_v23  ;;  %v74_v29 = vrot.slane %v48_v26, %v69_v23  ;;  %v105_v30 = vrot.slane %v47_v25, %v86_v24  ;;  %v52_v38 = vld [vmem:[#allocation2 + $0xe3] ss:$8 sm:$0x3] }
  0x16   :  { %155 = vmatprep.subr.mxu0 %v1486_v9  ;;  %99 = vperm.xlu1 %1305, %v56_v11   ;;  %v109_v31 = vrot.slane %v48_v26, %v86_v24  ;;  %v83_v32 = vrot.slane %v50_v27, %v69_v23  ;;  %v87_v33 = vrot.slane %v50_v27, %v86_v24 }
  0x17   :  { %156 = vmatpush1.msra.mxu0 %v1490_v10  ;;  %277 = vmatpush1.msra.mxu1 %v1482_v8  ;;  %v1558_v43 = vrot.slane %v52_v38, %v69_v23  ;;  %v1560_v44 = vrot.slane %v52_v38, %v86_v24 }
  0x18   :  { %157 = vmatprep.subr.mxu0 %v1497_v12  ;;  %278 = vmatprep.subr.mxu1 %v1486_v9 }
  0x19   :  { %158 = vmatpush1.msra.mxu0 %v1500_v13  ;;  %59 = vperm.xlu0 %1304, %v55_v14  }
  0x1a   :  { %159 = vmatprep.subr.mxu0 %v1506_v15  ;;  %95 = vperm.xlu1 %1305, %v55_v14  }
  0x1b   :  { %160 = vmatpush1.msra.mxu0 %v1509_v16  ;;  %279 = vmatpush1.msra.mxu1 %v1490_v10 }
  0x1c   :  { %161 = vmatprep.subr.mxu0 %v1513_v17  ;;  %280 = vmatprep.subr.mxu1 %v1497_v12 }
  0x1d   :  { %162 = vmatpush1.msra.mxu0 %v1516_v18  ;;  %281 = vmatpush1.msra.mxu1 %v1500_v13 }
  0x1e   :  { %163 = vmatprep.subr.mxu0 %v1519_v19  ;;  %282 = vmatprep.subr.mxu1 %v1506_v15 }
  0x1f   :  { %164 = vmatpush1.msra.mxu0 %v1523_v20  ;;  %283 = vmatpush1.msra.mxu1 %v1509_v16 }
  0x20   :  { %198 = vmatmul.mubr.f32.vlgmr.msra.gmra.mxu0 %v1440_v0  ;;  %284 = vmatprep.subr.mxu1 %v1513_v17 }
  0x21   :  { %378 = vmatprep.subr.mxu0 %v1467_v3  ;;  %285 = vmatpush1.msra.mxu1 %v1516_v18 }
  0x22   :  { %379 = vmatpush1.msra.mxu0 %v1469_v4  ;;  %286 = vmatprep.subr.mxu1 %v1519_v19 }
  0x23   :  { %380 = vmatprep.subr.mxu0 %v1471_v5  ;;  %287 = vmatpush1.msra.mxu1 %v1523_v20 }
  0x24   :  { %381 = vmatpush1.msra.mxu0 %v1474_v6  ;;  %426 = vmatprep.mubr.f32.mxu0 %v1440_v0 }
  0x25   :  { %382 = vmatprep.subr.mxu0 %v1478_v7  ;;  %484 = vmatprep.subr.mxu1 %v1467_v3 }
  0x26   :  { %383 = vmatpush1.msra.mxu0 %v1482_v8  ;;  %1306 = vset.pattern.permute.xlu0 %v1442_v2 }
  0x27   :  { %384 = vmatprep.subr.mxu0 %v1486_v9 }
  0x28   :  { %385 = vmatpush1.msra.mxu0 %v1490_v10 }
  0x29   :  { %386 = vmatprep.subr.mxu0 %v1497_v12 }
  0x2a   :  { %387 = vmatpush1.msra.mxu0 %v1500_v13 }
  0x2b   :  { %388 = vmatprep.subr.mxu0 %v1506_v15 }
  0x2c   :  { %389 = vmatpush1.msra.mxu0 %v1509_v16 }
  0x2d   :  { %390 = vmatprep.subr.mxu0 %v1513_v17 }
  0x2e   :  { %391 = vmatpush1.msra.mxu0 %v1516_v18 }
  0x2f   :  { %392 = vmatprep.subr.mxu0 %v1519_v19 }
  0x30   :  { %393 = vmatpush1.msra.mxu0 %v1523_v20 }
  0x31   :  { %590 = vmatprep.subr.mxu0 %v1467_v3 }
  0x90   :  { %v65_v34 = vpop.permute.xlu0 %64 }
  0x91   :  { %v77_v35 = vmul.f32 %v70_v28, %v65_v34  ;;  %v78_v36 = vmul.f32 %v74_v29, %v65_v34  ;;  %v100_v37 = vpop.permute.xlu1 %99 }
  0x92   :  { %v112_v39 = vmul.f32 %v105_v30, %v100_v37  ;;  %v113_v40 = vmul.f32 %v109_v31, %v100_v37 }
  0x93   :  { %v92_v41 = vadd.f32 %v83_v32, %v77_v35  ;;  %v93_v42 = vadd.f32 %v87_v33, %v78_v36 }
  0x94   :  { %v60_v45 = vpop.permute.xlu0 %59 }
  0x95   :  { %v116_v46 = vadd.f32 %v112_v39, %v92_v41  ;;  %v1562_v47 = vadd.f32 %v113_v40, %v93_v42  ;;  %v75_v48 = vmul.f32 %v70_v28, %v60_v45  ;;  %v76_v49 = vmul.f32 %v74_v29, %v60_v45  ;;  %v96_v50 = vpop.permute.xlu1 %95 }
  0x96   :  { %v110_v51 = vmul.f32 %v105_v30, %v96_v50  ;;  %v111_v52 = vmul.f32 %v109_v31, %v96_v50 }
  0x97   :  { %v239_v53 = vadd.f32 %v1558_v43, %v116_v46  ;;  %v240_v54 = vadd.f32 %v1560_v44, %v1562_v47  ;;  %v90_v55 = vadd.f32 %v83_v32, %v75_v48  ;;  %v91_v56 = vadd.f32 %v87_v33, %v76_v49 }
  0x99   :  { %v114_v57 = vadd.f32 %v110_v51, %v90_v55  ;;  %v115_v58 = vadd.f32 %v111_v52, %v91_v56  ;;  %v353_v59 = vrot.slane %v239_v53, 1  ;;  %v356_v60 = vrot.slane %v240_v54, 1 }
  0x9a   :  { %v459_v61 = vrot.slane %v239_v53, 2  ;;  %v462_v62 = vrot.slane %v240_v54, 2  ;;  %v565_v63 = vrot.slane %v239_v53, 3  ;;  %v568_v1 = vrot.slane %v240_v54, 3 }
  0x9b   :  { %v237_v2 = vadd.f32 %v1558_v43, %v114_v57  ;;  %v238_v11 = vadd.f32 %v1560_v44, %v115_v58  ;;  %v671_v14 = vrot.slane %v239_v53, 4  ;;  %v674_v21 = vrot.slane %v240_v54, 4 }
  0x9c   :  { %v777_v22 = vrot.slane %v239_v53, 5  ;;  %v780_v23 = vrot.slane %v240_v54, 5  ;;  %v883_v24 = vrot.slane %v239_v53, 6  ;;  %v886_v25 = vrot.slane %v240_v54, 6 }
  0x9d   :  { %v248_v26 = vrot.slane %v237_v2, 1  ;;  %v250_v27 = vrot.slane %v238_v11, 1  ;;  %v352_v28 = vrot.slane %v237_v2, 2  ;;  %v355_v29 = vrot.slane %v238_v11, 2 }
  0x9e   :  { %v458_v30 = vrot.slane %v237_v2, 3  ;;  %v461_v31 = vrot.slane %v238_v11, 3  ;;  %v564_v32 = vrot.slane %v237_v2, 4  ;;  %v567_v33 = vrot.slane %v238_v11, 4 }
  0x9f   :  { %v1570_v34 = vsel %vm123_vm0, %v239_v53, %v248_v26  ;;  %v1573_v35 = vsel %vm123_vm0, %v240_v54, %v250_v27  ;;  %v1576_v36 = vsel %vm123_vm0, %v353_v59, %v352_v28  ;;  %v1579_v37 = vsel %vm123_vm0, %v356_v60, %v355_v29 }
  0xa0   :  { %v1582_v38 = vsel %vm123_vm0, %v459_v61, %v458_v30  ;;  %v1585_v39 = vsel %vm123_vm0, %v462_v62, %v461_v31  ;;  %v1588_v40 = vsel %vm123_vm0, %v565_v63, %v564_v32  ;;  %v1591_v41 = vsel %vm123_vm0, %v568_v1, %v567_v33 }
  0xa1   :  { %v670_v42 = vrot.slane %v237_v2, 5  ;;  %v673_v45 = vrot.slane %v238_v11, 5  ;;  %v776_v48 = vrot.slane %v237_v2, 6  ;;  %v779_v49 = vrot.slane %v238_v11, 6 }
  0xa2   :  { %v882_v50 = vrot.slane %v237_v2, 7  ;;  %v885_v51 = vrot.slane %v238_v11, 7  ;;  %v122_v60 = vrot.slane %v116_v46, 7  ;;  %v125_v2 = vrot.slane %v1562_v47, 7 }
  0xa3   :  { %v1594_v52 = vsel %vm123_vm0, %v671_v14, %v670_v42  ;;  %v1597_v53 = vsel %vm123_vm0, %v674_v21, %v673_v45  ;;  %v1600_v54 = vsel %vm123_vm0, %v777_v22, %v776_v48  ;;  %v1603_v55 = vsel %vm123_vm0, %v780_v23, %v779_v49 }
  0xa4   :  { %v1606_v56 = vsel %vm123_vm0, %v883_v24, %v882_v50  ;;  %v1609_v59 = vsel %vm123_vm0, %v886_v25, %v885_v51  ;;  %v124_v61 = vsel %vm123_vm0, %v122_v60, %v114_v57  ;;  %v126_v14 = vsel %vm123_vm0, %v125_v2, %v115_v58 }
  0xe0   :  { %v199_v62 = vpop.f32.mrf.mxu0 }
  0xe1   :  { %v200_v63 = vadd.f32 %v199_v62, %v124_v61 }
  0xe2   :  { %v201_v11 = vpop.f32.mrf.mxu0 }
  0xe3   :  { %v1241_v1 = vmul.f32 -1.442695, %v200_v63  ;;  %v202_v21 = vadd.f32 %v201_v11, %v126_v14 }
  0xe5   :  { %1307 = vpow2.f32 %v1241_v1  ;;  %v1242_v46 = vmul.f32 -1.442695, %v202_v21 }
  0xe6   :  { %1309 = vtanh.f32 %v202_v21 }
  0xf2   :  { %v1308_v22 = vpop.eup %1307 }
  0xf3   :  { %v210_v23 = vadd.f32 1.0, %v1308_v22  ;;  %v1310_v24 = vpop.eup %1309 }
  0xf5   :  { %1311 = vrcp.f32 %v210_v23 }
  0xf6   :  { %1313 = vpow2.f32 %v1242_v46 }
 0x102   :  { %v1312_v25 = vpop.eup %1311 }
 0x103   :  { %v218_v26 = vmul.f32 %v1312_v25, %v1310_v24  ;;  %v1314_v57 = vpop.eup %1313  ;;  %v217_v28 = vmul.f32 0.0, %v1312_v25 }
 0x104   :  { %v211_v27 = vadd.f32 1.0, %v1314_v57 }
 0x105   :  { %220 = vrot.lane.b32.xlu0 %v218_v26, %s1443_s0 }
 0x106   :  { %1315 = vrcp.f32 %v211_v27 }
 0x113   :  { %v1316_v58 = vpop.eup %1315 }
 0x177   :  { %v221_v47 = vpop.permute.xlu0 %220 }
 0x178   :  { %v223_v29 = vadd.f32 %v221_v47, %v217_v28 }
 0x17a   :  { %1317 = vtanh.f32 %v223_v29 }
 0x187   :  { %v1318_v30 = vpop.eup %1317 }
 0x188   :  { %v225_v31 = vmul.f32 %v1318_v30, %v1316_v58 }
 0x18a   :  { %242 = vrot.lane.b32.xlu1 %v225_v31, %s1443_s0 }
 0x1fc   :  { %v243_v32 = vpop.permute.xlu1 %242 }
 0x1fd   :  { %1243 = vmatmul.mubr.msk.f32.vlgmr.msra.gmra.mxu1 %vm129_vm1, %v243_v32 }
 0x1fe   :  { %485 = vmatpush1.msra.mxu1 %v1469_v4  ;;  %532 = vmatprep.mubr.f32.mxu1 %v1440_v0 }
 0x1ff   :  { %486 = vmatprep.subr.mxu1 %v1471_v5 }
 0x200   :  { %487 = vmatpush1.msra.mxu1 %v1474_v6 }
 0x201   :  { %488 = vmatprep.subr.mxu1 %v1478_v7 }
 0x202   :  { %489 = vmatpush1.msra.mxu1 %v1482_v8 }
 0x203   :  { %490 = vmatprep.subr.mxu1 %v1486_v9 }
 0x204   :  { %491 = vmatpush1.msra.mxu1 %v1490_v10 }
 0x205   :  { %492 = vmatprep.subr.mxu1 %v1497_v12 }
 0x206   :  { %493 = vmatpush1.msra.mxu1 %v1500_v13 }
 0x207   :  { %494 = vmatprep.subr.mxu1 %v1506_v15 }
 0x208   :  { %495 = vmatpush1.msra.mxu1 %v1509_v16 }
 0x209   :  { %496 = vmatprep.subr.mxu1 %v1513_v17 }
 0x20a   :  { %497 = vmatpush1.msra.mxu1 %v1516_v18 }
 0x20b   :  { %498 = vmatprep.subr.mxu1 %v1519_v19 }
 0x20c   :  { %499 = vmatpush1.msra.mxu1 %v1523_v20 }
 0x20d   :  { %696 = vmatprep.subr.mxu1 %v1467_v3 }
 0x2bd   :  { %v322_v33 = vpop.f32.mrf.mxu1 }
 0x2be   :  { %v323_v42 = vadd.f32 %v322_v33, %v1570_v34 }
 0x2bf   :  { %v324_v48 = vpop.f32.mrf.mxu1 }
 0x2c0   :  { %v1244_v45 = vmul.f32 -1.442695, %v323_v42  ;;  %v325_v49 = vadd.f32 %v324_v48, %v1573_v35 }
 0x2c2   :  { %1319 = vpow2.f32 %v1244_v45  ;;  %v1245_v63 = vmul.f32 -1.442695, %v325_v49 }
 0x2c3   :  { %1321 = vtanh.f32 %v325_v49 }
 0x2cf   :  { %v1320_v50 = vpop.eup %1319 }
 0x2d0   :  { %v333_v51 = vadd.f32 1.0, %v1320_v50  ;;  %v1322_v60 = vpop.eup %1321 }
 0x2d2   :  { %1323 = vrcp.f32 %v333_v51 }
 0x2d3   :  { %1325 = vpow2.f32 %v1245_v63 }
 0x2df   :  { %v1324_v61 = vpop.eup %1323 }
 0x2e0   :  { %v341_v62 = vmul.f32 %v1324_v61, %v1322_v60  ;;  %v1326_v1 = vpop.eup %1325  ;;  %v340_v11 = vmul.f32 %v1324_v61, %v223_v29 }
 0x2e1   :  { %v334_v2 = vadd.f32 1.0, %v1326_v1 }
 0x2e2   :  { %343 = vrot.lane.b32.xlu0 %v341_v62, %s1443_s0 }
 0x2e3   :  { %1327 = vrcp.f32 %v334_v2 }
 0x2f0   :  { %v1328_v21 = vpop.eup %1327 }
 0x354   :  { %v344_v34 = vpop.permute.xlu0 %343 }
 0x355   :  { %v346_v14 = vadd.f32 %v344_v34, %v340_v11 }
 0x357   :  { %1329 = vtanh.f32 %v346_v14 }
 0x364   :  { %v1330_v35 = vpop.eup %1329 }
 0x365   :  { %v348_v22 = vmul.f32 %v1330_v35, %v1328_v21 }
 0x367   :  { %350 = vrot.lane.b32.xlu1 %v348_v22, %s1443_s0 }
 0x3d9   :  { %v351_v23 = vpop.permute.xlu1 %350 }
 0x3da   :  { %1246 = vmatmul.mubr.msk.f32.vlgmr.msra.gmra.mxu0 %vm129_vm1, %v351_v23 }
 0x3db   :  { %591 = vmatpush1.msra.mxu0 %v1469_v4  ;;  %638 = vmatprep.mubr.f32.mxu0 %v1440_v0 }
 0x3dc   :  { %592 = vmatprep.subr.mxu0 %v1471_v5 }
 0x3dd   :  { %593 = vmatpush1.msra.mxu0 %v1474_v6 }
 0x3de   :  { %594 = vmatprep.subr.mxu0 %v1478_v7 }
 0x3df   :  { %595 = vmatpush1.msra.mxu0 %v1482_v8 }
 0x3e0   :  { %596 = vmatprep.subr.mxu0 %v1486_v9 }
 0x3e1   :  { %597 = vmatpush1.msra.mxu0 %v1490_v10 }
 0x3e2   :  { %598 = vmatprep.subr.mxu0 %v1497_v12 }
 0x3e3   :  { %599 = vmatpush1.msra.mxu0 %v1500_v13 }
 0x3e4   :  { %600 = vmatprep.subr.mxu0 %v1506_v15 }
 0x3e5   :  { %601 = vmatpush1.msra.mxu0 %v1509_v16 }
 0x3e6   :  { %602 = vmatprep.subr.mxu0 %v1513_v17 }
 0x3e7   :  { %603 = vmatpush1.msra.mxu0 %v1516_v18 }
 0x3e8   :  { %604 = vmatprep.subr.mxu0 %v1519_v19 }
 0x3e9   :  { %605 = vmatpush1.msra.mxu0 %v1523_v20 }
 0x3ea   :  { %802 = vmatprep.subr.mxu0 %v1467_v3 }
 0x49a   :  { %v428_v24 = vpop.f32.mrf.mxu0 }
 0x49b   :  { %v429_v25 = vadd.f32 %v428_v24, %v1576_v36 }
 0x49c   :  { %v430_v46 = vpop.f32.mrf.mxu0 }
 0x49d   :  { %v1247_v26 = vmul.f32 -1.442695, %v429_v25  ;;  %v431_v57 = vadd.f32 %v430_v46, %v1579_v37 }
 0x49f   :  { %1331 = vpow2.f32 %v1247_v26  ;;  %v1248_v30 = vmul.f32 -1.442695, %v431_v57 }
 0x4a0   :  { %1333 = vtanh.f32 %v431_v57 }
 0x4ac   :  { %v1332_v27 = vpop.eup %1331 }
 0x4ad   :  { %v439_v28 = vadd.f32 1.0, %v1332_v27  ;;  %v1334_v47 = vpop.eup %1333 }
 0x4af   :  { %1335 = vrcp.f32 %v439_v28 }
 0x4b0   :  { %1337 = vpow2.f32 %v1248_v30 }
 0x4bc   :  { %v1336_v29 = vpop.eup %1335 }
 0x4bd   :  { %v447_v58 = vmul.f32 %v1336_v29, %v1334_v47  ;;  %v1338_v31 = vpop.eup %1337  ;;  %v446_v33 = vmul.f32 %v1336_v29, %v346_v14 }
 0x4be   :  { %v440_v32 = vadd.f32 1.0, %v1338_v31 }
 0x4bf   :  { %449 = vrot.lane.b32.xlu0 %v447_v58, %s1443_s0 }
 0x4c0   :  { %1339 = vrcp.f32 %v440_v32 }
 0x4cd   :  { %v1340_v45 = vpop.eup %1339 }
 0x531   :  { %v450_v36 = vpop.permute.xlu0 %449 }
 0x532   :  { %v452_v42 = vadd.f32 %v450_v36, %v446_v33 }
 0x534   :  { %1341 = vtanh.f32 %v452_v42 }
 0x541   :  { %v1342_v37 = vpop.eup %1341 }
 0x542   :  { %v454_v48 = vmul.f32 %v1342_v37, %v1340_v45 }
 0x544   :  { %456 = vrot.lane.b32.xlu1 %v454_v48, %s1443_s0 }
 0x5b6   :  { %v457_v49 = vpop.permute.xlu1 %456 }
 0x5b7   :  { %1249 = vmatmul.mubr.msk.f32.vlgmr.msra.gmra.mxu1 %vm129_vm1, %v457_v49 }
 0x5b8   :  { %697 = vmatpush1.msra.mxu1 %v1469_v4  ;;  %744 = vmatprep.mubr.f32.mxu1 %v1440_v0 }
 0x5b9   :  { %698 = vmatprep.subr.mxu1 %v1471_v5 }
 0x5ba   :  { %699 = vmatpush1.msra.mxu1 %v1474_v6 }
 0x5bb   :  { %700 = vmatprep.subr.mxu1 %v1478_v7 }
 0x5bc   :  { %701 = vmatpush1.msra.mxu1 %v1482_v8 }
 0x5bd   :  { %702 = vmatprep.subr.mxu1 %v1486_v9 }
 0x5be   :  { %703 = vmatpush1.msra.mxu1 %v1490_v10 }
 0x5bf   :  { %704 = vmatprep.subr.mxu1 %v1497_v12 }
 0x5c0   :  { %705 = vmatpush1.msra.mxu1 %v1500_v13 }
 0x5c1   :  { %706 = vmatprep.subr.mxu1 %v1506_v15 }
 0x5c2   :  { %707 = vmatpush1.msra.mxu1 %v1509_v16 }
 0x5c3   :  { %708 = vmatprep.subr.mxu1 %v1513_v17 }
 0x5c4   :  { %709 = vmatpush1.msra.mxu1 %v1516_v18 }
 0x5c5   :  { %710 = vmatprep.subr.mxu1 %v1519_v19 }
 0x5c6   :  { %711 = vmatpush1.msra.mxu1 %v1523_v20 }
 0x5c7   :  { %908 = vmatprep.subr.mxu1 %v1467_v3 }
 0x677   :  { %v534_v50 = vpop.f32.mrf.mxu1 }
 0x678   :  { %v535_v51 = vadd.f32 %v534_v50, %v1582_v38 }
 0x679   :  { %v536_v61 = vpop.f32.mrf.mxu1 }
 0x67a   :  { %v1250_v60 = vmul.f32 -1.442695, %v535_v51  ;;  %v537_v62 = vadd.f32 %v536_v61, %v1585_v39 }
 0x67c   :  { %1343 = vpow2.f32 %v1250_v60  ;;  %v1251_v14 = vmul.f32 -1.442695, %v537_v62 }
 0x67d   :  { %1345 = vtanh.f32 %v537_v62 }
 0x689   :  { %v1344_v63 = vpop.eup %1343 }
 0x68a   :  { %v545_v1 = vadd.f32 1.0, %v1344_v63  ;;  %v1346_v2 = vpop.eup %1345 }
 0x68c   :  { %1347 = vrcp.f32 %v545_v1 }
 0x68d   :  { %1349 = vpow2.f32 %v1251_v14 }
 0x699   :  { %v1348_v11 = vpop.eup %1347 }
 0x69a   :  { %v553_v34 = vmul.f32 %v1348_v11, %v1346_v2  ;;  %v1350_v21 = vpop.eup %1349  ;;  %v552_v22 = vmul.f32 %v1348_v11, %v452_v42 }
 0x69b   :  { %v546_v35 = vadd.f32 1.0, %v1350_v21 }
 0x69c   :  { %555 = vrot.lane.b32.xlu0 %v553_v34, %s1443_s0 }
 0x69d   :  { %1351 = vrcp.f32 %v546_v35 }
 0x6aa   :  { %v1352_v24 = vpop.eup %1351 }
 0x70e   :  { %v556_v38 = vpop.permute.xlu0 %555 }
 0x70f   :  { %v558_v23 = vadd.f32 %v556_v38, %v552_v22 }
 0x711   :  { %1353 = vtanh.f32 %v558_v23 }
 0x71e   :  { %v1354_v39 = vpop.eup %1353 }
 0x71f   :  { %v560_v25 = vmul.f32 %v1354_v39, %v1352_v24 }
 0x721   :  { %562 = vrot.lane.b32.xlu1 %v560_v25, %s1443_s0 }
 0x793   :  { %v563_v26 = vpop.permute.xlu1 %562 }
 0x794   :  { %1252 = vmatmul.mubr.msk.f32.vlgmr.msra.gmra.mxu0 %vm129_vm1, %v563_v26 }
 0x795   :  { %803 = vmatpush1.msra.mxu0 %v1469_v4  ;;  %850 = vmatprep.mubr.f32.mxu0 %v1440_v0 }
 0x796   :  { %804 = vmatprep.subr.mxu0 %v1471_v5 }
 0x797   :  { %805 = vmatpush1.msra.mxu0 %v1474_v6 }
 0x798   :  { %806 = vmatprep.subr.mxu0 %v1478_v7 }
 0x799   :  { %807 = vmatpush1.msra.mxu0 %v1482_v8 }
 0x79a   :  { %808 = vmatprep.subr.mxu0 %v1486_v9 }
 0x79b   :  { %809 = vmatpush1.msra.mxu0 %v1490_v10 }
 0x79c   :  { %810 = vmatprep.subr.mxu0 %v1497_v12 }
 0x79d   :  { %811 = vmatpush1.msra.mxu0 %v1500_v13 }
 0x79e   :  { %812 = vmatprep.subr.mxu0 %v1506_v15 }
 0x79f   :  { %813 = vmatpush1.msra.mxu0 %v1509_v16 }
 0x7a0   :  { %814 = vmatprep.subr.mxu0 %v1513_v17 }
 0x7a1   :  { %815 = vmatpush1.msra.mxu0 %v1516_v18 }
 0x7a2   :  { %816 = vmatprep.subr.mxu0 %v1519_v19 }
 0x7a3   :  { %817 = vmatpush1.msra.mxu0 %v1523_v20 }
 0x7a4   :  { %1006 = vmatprep.subr.mxu0 %v1467_v3 }
 0x854   :  { %v640_v46 = vpop.f32.mrf.mxu0 }
 0x855   :  { %v641_v57 = vadd.f32 %v640_v46, %v1588_v40 }
 0x856   :  { %v642_v28 = vpop.f32.mrf.mxu0 }
 0x857   :  { %v1253_v27 = vmul.f32 -1.442695, %v641_v57  ;;  %v643_v47 = vadd.f32 %v642_v28, %v1591_v41 }
 0x859   :  { %1355 = vpow2.f32 %v1253_v27  ;;  %v1254_v33 = vmul.f32 -1.442695, %v643_v47 }
 0x85a   :  { %1357 = vtanh.f32 %v643_v47 }
 0x866   :  { %v1356_v29 = vpop.eup %1355 }
 0x867   :  { %v651_v58 = vadd.f32 1.0, %v1356_v29  ;;  %v1358_v30 = vpop.eup %1357 }
 0x869   :  { %1359 = vrcp.f32 %v651_v58 }
 0x86a   :  { %1361 = vpow2.f32 %v1254_v33 }
 0x876   :  { %v1360_v31 = vpop.eup %1359 }
 0x877   :  { %v659_v32 = vmul.f32 %v1360_v31, %v1358_v30  ;;  %v1362_v3 = vpop.eup %1361  ;;  %v658_v42 = vmul.f32 %v1360_v31, %v558_v23 }
 0x878   :  { %v652_v36 = vadd.f32 1.0, %v1362_v3 }
 0x879   :  { %661 = vrot.lane.b32.xlu0 %v659_v32, %s1443_s0 }
 0x87a   :  { %1363 = vrcp.f32 %v652_v36 }
 0x887   :  { %v1364_v37 = vpop.eup %1363 }
 0x8eb   :  { %v662_v40 = vpop.permute.xlu0 %661 }
 0x8ec   :  { %v664_v45 = vadd.f32 %v662_v40, %v658_v42 }
 0x8ee   :  { %1365 = vtanh.f32 %v664_v45 }
 0x8fb   :  { %v1366_v41 = vpop.eup %1365 }
 0x8fc   :  { %v666_v48 = vmul.f32 %v1366_v41, %v1364_v37 }
 0x8fe   :  { %668 = vrot.lane.b32.xlu1 %v666_v48, %s1443_s0 }
 0x970   :  { %v669_v49 = vpop.permute.xlu1 %668 }
 0x971   :  { %1255 = vmatmul.mubr.msk.f32.vlgmr.msra.gmra.mxu1 %vm129_vm1, %v669_v49 }
 0x972   :  { %909 = vmatpush1.msra.mxu1 %v1469_v4  ;;  %956 = vmatprep.mubr.f32.mxu1 %v1440_v0 }
 0x973   :  { %910 = vmatprep.subr.mxu1 %v1471_v5 }
 0x974   :  { %911 = vmatpush1.msra.mxu1 %v1474_v6 }
 0x975   :  { %912 = vmatprep.subr.mxu1 %v1478_v7 }
 0x976   :  { %913 = vmatpush1.msra.mxu1 %v1482_v8 }
 0x977   :  { %914 = vmatprep.subr.mxu1 %v1486_v9 }
 0x978   :  { %915 = vmatpush1.msra.mxu1 %v1490_v10 }
 0x979   :  { %916 = vmatprep.subr.mxu1 %v1497_v12 }
 0x97a   :  { %917 = vmatpush1.msra.mxu1 %v1500_v13 }
 0x97b   :  { %918 = vmatprep.subr.mxu1 %v1506_v15 }
 0x97c   :  { %919 = vmatpush1.msra.mxu1 %v1509_v16 }
 0x97d   :  { %920 = vmatprep.subr.mxu1 %v1513_v17 }
 0x97e   :  { %921 = vmatpush1.msra.mxu1 %v1516_v18 }
 0x97f   :  { %922 = vmatprep.subr.mxu1 %v1519_v19 }
 0x980   :  { %923 = vmatpush1.msra.mxu1 %v1523_v20 }
 0x981   :  { %1277 = vmatprep.subr.mxu1 %v1440_v0 }
 0xa31   :  { %v746_v50 = vpop.f32.mrf.mxu1 }
 0xa32   :  { %v747_v51 = vadd.f32 %v746_v50, %v1594_v52 }
 0xa33   :  { %v748_v61 = vpop.f32.mrf.mxu1 }
 0xa34   :  { %v1256_v60 = vmul.f32 -1.442695, %v747_v51  ;;  %v749_v62 = vadd.f32 %v748_v61, %v1597_v53 }
 0xa36   :  { %1367 = vpow2.f32 %v1256_v60  ;;  %v1257_v14 = vmul.f32 -1.442695, %v749_v62 }
 0xa37   :  { %1369 = vtanh.f32 %v749_v62 }
 0xa43   :  { %v1368_v63 = vpop.eup %1367 }
 0xa44   :  { %v757_v1 = vadd.f32 1.0, %v1368_v63  ;;  %v1370_v2 = vpop.eup %1369 }
 0xa46   :  { %1371 = vrcp.f32 %v757_v1 }
 0xa47   :  { %1373 = vpow2.f32 %v1257_v14  ;;  %v43_v14 = vld [vmem:[#allocation2 + $0xa0] sm:$0xff] }
 0xa53   :  { %v1372_v11 = vpop.eup %1371 }
 0xa54   :  { %v765_v34 = vmul.f32 %v1372_v11, %v1370_v2  ;;  %v1374_v21 = vpop.eup %1373  ;;  %v764_v22 = vmul.f32 %v1372_v11, %v664_v45 }
 0xa55   :  { %v758_v35 = vadd.f32 1.0, %v1374_v21 }
 0xa56   :  { %767 = vrot.lane.b32.xlu0 %v765_v34, %s1443_s0  ;;  %v44_v34 = vld [vmem:[#allocation2 + $0xb0] sm:$0xff] }
 0xa57   :  { %1375 = vrcp.f32 %v758_v35 }
 0xa64   :  { %v1376_v23 = vpop.eup %1375 }
 0xac8   :  { %v768_v52 = vpop.permute.xlu0 %767 }
 0xac9   :  { %v770_v38 = vadd.f32 %v768_v52, %v764_v22 }
 0xacb   :  { %1377 = vtanh.f32 %v770_v38 }
 0xad8   :  { %v1378_v53 = vpop.eup %1377 }
 0xad9   :  { %v772_v24 = vmul.f32 %v1378_v53, %v1376_v23 }
 0xadb   :  { %774 = vrot.lane.b32.xlu1 %v772_v24, %s1443_s0 }
 0xb4d   :  { %v775_v39 = vpop.permute.xlu1 %774 }
 0xb4e   :  { %1258 = vmatmul.mubr.msk.f32.vlgmr.msra.gmra.mxu0 %vm129_vm1, %v775_v39 }
 0xb4f   :  { %1007 = vmatpush1.msra.mxu0 %v1469_v4  ;;  %1054 = vmatprep.mubr.f32.mxu0 %v1440_v0 }
 0xb50   :  { %1008 = vmatprep.subr.mxu0 %v1471_v5 }
 0xb51   :  { %1009 = vmatpush1.msra.mxu0 %v1474_v6 }
 0xb52   :  { %1010 = vmatprep.subr.mxu0 %v1478_v7 }
 0xb53   :  { %1011 = vmatpush1.msra.mxu0 %v1482_v8 }
 0xb54   :  { %1012 = vmatprep.subr.mxu0 %v1486_v9 }
 0xb55   :  { %1013 = vmatpush1.msra.mxu0 %v1490_v10 }
 0xb56   :  { %1014 = vmatprep.subr.mxu0 %v1497_v12 }
 0xb57   :  { %1015 = vmatpush1.msra.mxu0 %v1500_v13 }
 0xb58   :  { %1016 = vmatprep.subr.mxu0 %v1506_v15 }
 0xb59   :  { %1017 = vmatpush1.msra.mxu0 %v1509_v16 }
 0xb5a   :  { %1018 = vmatprep.subr.mxu0 %v1513_v17 }
 0xb5b   :  { %1019 = vmatpush1.msra.mxu0 %v1516_v18 }
 0xb5c   :  { %1020 = vmatprep.subr.mxu0 %v1519_v19 }
 0xb5d   :  { %1021 = vmatpush1.msra.mxu0 %v1523_v20 }
 0xc0e   :  { %v852_v4 = vpop.f32.mrf.mxu0 }
 0xc0f   :  { %v853_v5 = vadd.f32 %v852_v4, %v1600_v54 }
 0xc10   :  { %v854_v7 = vpop.f32.mrf.mxu0 }
 0xc11   :  { %v1259_v6 = vmul.f32 -1.442695, %v853_v5  ;;  %v855_v8 = vadd.f32 %v854_v7, %v1603_v55  ;;  %v46_v5 = vld [vmem:[#allocation2 + $0xd0] sm:$0xff]  ;;  %v53_v7 = vld [vmem:[#allocation2 + $0xe4] ss:$0 sm:$0xff] }
 0xc13   :  { %1379 = vpow2.f32 %v1259_v6  ;;  %v1260_v16 = vmul.f32 -1.442695, %v855_v8  ;;  %v45_v6 = vld [vmem:[#allocation2 + $0xc0] sm:$0xff] }
 0xc14   :  { %1381 = vtanh.f32 %v855_v8 }
 0xc20   :  { %v1380_v9 = vpop.eup %1379 }
 0xc21   :  { %v863_v10 = vadd.f32 1.0, %v1380_v9  ;;  %v1382_v12 = vpop.eup %1381 }
 0xc23   :  { %1383 = vrcp.f32 %v863_v10 }
 0xc24   :  { %1385 = vpow2.f32 %v1260_v16 }
 0xc30   :  { %v1384_v13 = vpop.eup %1383 }
 0xc31   :  { %v871_v15 = vmul.f32 %v1384_v13, %v1382_v12  ;;  %v1386_v17 = vpop.eup %1385  ;;  %v870_v19 = vmul.f32 %v1384_v13, %v770_v38  ;;  %v54_v13 = vld [vmem:[#allocation2 + $0xe5] ss:$0 sm:$0xff] }
 0xc32   :  { %v864_v18 = vadd.f32 1.0, %v1386_v17 }
 0xc33   :  { %873 = vrot.lane.b32.xlu0 %v871_v15, %s1443_s0 }
 0xc34   :  { %1387 = vrcp.f32 %v864_v18 }
 0xc41   :  { %v1388_v25 = vpop.eup %1387 }
 0xca5   :  { %v874_v20 = vpop.permute.xlu0 %873 }
 0xca6   :  { %v876_v54 = vadd.f32 %v874_v20, %v870_v19 }
 0xca8   :  { %1389 = vtanh.f32 %v876_v54 }
 0xcb5   :  { %v1390_v55 = vpop.eup %1389 }
 0xcb6   :  { %v878_v26 = vmul.f32 %v1390_v55, %v1388_v25 }
 0xcb8   :  { %880 = vrot.lane.b32.xlu1 %v878_v26, %s1443_s0 }
 0xd2a   :  { %v881_v46 = vpop.permute.xlu1 %880 }
 0xd2b   :  { %1261 = vmatmul.mubr.msk.f32.vlgmr.msra.gmra.mxu1 %vm129_vm1, %v881_v46 }
 0xd2c   :  { %1278 = vmatpush3.msra.mxu1 %v44_v34  ;;  %1285 = vmatprep.mubr.msk.f32.mxu1 %vm1444_vm2, %v1440_v0 }
 0xd2d   :  { %1279 = vmatprep.subr.mxu1 %v1440_v0 }
 0xd2e   :  { %1280 = vmatpush3.msra.mxu1 %v43_v14 }
 0xd2f   :  { %1281 = vmatprep.subr.mxu1 %v1440_v0 }
 0xdeb   :  { %v958_v57 = vpop.f32.mrf.mxu1 }
 0xdec   :  { %v959_v27 = vadd.f32 %v958_v57, %v1606_v56 }
 0xded   :  { %v960_v47 = vpop.f32.mrf.mxu1 }
 0xdee   :  { %v1262_v28 = vmul.f32 -1.442695, %v959_v27  ;;  %v961_v29 = vadd.f32 %v960_v47, %v1609_v59 }
 0xdf0   :  { %1391 = vpow2.f32 %v1262_v28  ;;  %v1263_v3 = vmul.f32 -1.442695, %v961_v29 }
 0xdf1   :  { %1393 = vtanh.f32 %v961_v29 }
 0xdfd   :  { %v1392_v58 = vpop.eup %1391 }
 0xdfe   :  { %v969_v30 = vadd.f32 1.0, %v1392_v58  ;;  %v1394_v31 = vpop.eup %1393 }
 0xe00   :  { %1395 = vrcp.f32 %v969_v30 }
 0xe01   :  { %1397 = vpow2.f32 %v1263_v3 }
 0xe0d   :  { %v1396_v32 = vpop.eup %1395 }
 0xe0e   :  { %v977_v33 = vmul.f32 %v1396_v32, %v1394_v31  ;;  %v1398_v36 = vpop.eup %1397  ;;  %v976_v40 = vmul.f32 %v1396_v32, %v876_v54 }
 0xe0f   :  { %v970_v42 = vadd.f32 1.0, %v1398_v36 }
 0xe10   :  { %979 = vrot.lane.b32.xlu0 %v977_v33, %s1443_s0 }
 0xe11   :  { %1399 = vrcp.f32 %v970_v42 }
 0xe1e   :  { %v1400_v37 = vpop.eup %1399 }
 0xe82   :  { %v980_v56 = vpop.permute.xlu0 %979 }
 0xe83   :  { %v982_v45 = vadd.f32 %v980_v56, %v976_v40 }
 0xe85   :  { %1401 = vtanh.f32 %v982_v45 }
 0xe92   :  { %v1402_v59 = vpop.eup %1401 }
 0xe93   :  { %v984_v41 = vmul.f32 %v1402_v59, %v1400_v37 }
 0xe95   :  { %986 = vrot.lane.b32.xlu1 %v984_v41, %s1443_s0 }
 0xf07   :  { %v987_v48 = vpop.permute.xlu1 %986 }
 0xf08   :  { %1264 = vmatmul.mubr.msk.f32.vlgmr.msra.gmra.mxu0 %vm129_vm1, %v987_v48 }
 0xfc8   :  { %v1056_v49 = vpop.f32.mrf.mxu0 }
 0xfc9   :  { %v1057_v50 = vadd.f32 %v1056_v49, %v1558_v43  ;;  %v42_v43 = vld [vmem:[#allocation2 + $0x90] sm:$0xff] }
 0xfca   :  { %v1058_v60 = vpop.f32.mrf.mxu0  ;;  %1282 = vmatpush3.msra.mxu1 %v42_v43 }
 0xfcb   :  { %v1265_v51 = vmul.f32 -1.442695, %v1057_v50  ;;  %v1059_v61 = vadd.f32 %v1058_v60, %v1560_v44  ;;  %v41_v44 = vld [vmem:[#allocation2 + $0x80] sm:$0xff]  ;;  %1283 = vmatprep.subr.mxu1 %v1440_v0 }
 0xfcc   :  { %1284 = vmatpush3.msra.mxu1 %v41_v44 }
 0xfcd   :  { %1403 = vpow2.f32 %v1265_v51  ;;  %1288 = vmatprep.subr.mxu1 %v1440_v0  ;;  %v1266_v21 = vmul.f32 -1.442695, %v1059_v61 }
 0xfce   :  { %1405 = vtanh.f32 %v1059_v61 }
 0xfda   :  { %v1404_v62 = vpop.eup %1403 }
 0xfdb   :  { %v1067_v63 = vadd.f32 1.0, %v1404_v62  ;;  %v1406_v1 = vpop.eup %1405 }
 0xfdd   :  { %1407 = vrcp.f32 %v1067_v63 }
 0xfde   :  { %1409 = vpow2.f32 %v1266_v21 }
 0xfea   :  { %v1408_v2 = vpop.eup %1407 }
 0xfeb   :  { %v1075_v11 = vmul.f32 %v1408_v2, %v1406_v1  ;;  %v1410_v35 = vpop.eup %1409  ;;  %v1074_v52 = vmul.f32 %v1408_v2, %v982_v45 }
 0xfec   :  { %v1068_v22 = vadd.f32 1.0, %v1410_v35 }
 0xfed   :  { %1077 = vrot.lane.b32.xlu0 %v1075_v11, %s1443_s0 }
 0xfee   :  { %1411 = vrcp.f32 %v1068_v22 }
 0xffb   :  { %v1412_v53 = vpop.eup %1411 }
0x105f   :  { %v1078_v38 = vpop.permute.xlu0 %1077 }
0x1060   :  { %v1080_v23 = vadd.f32 %v1078_v38, %v1074_v52 }
0x1062   :  { %1413 = vtanh.f32 %v1080_v23 }
0x106f   :  { %v1414_v24 = vpop.eup %1413 }
0x1070   :  { %v1082_v39 = vmul.f32 %v1414_v24, %v1412_v53 }
0x1072   :  { %1084 = vrot.lane.b32.xlu1 %v1082_v39, %s1445_s19 }
0x10e4   :  { %v1085_v4 = vpop.permute.xlu1 %1084 }
0x10e5   :  { %1286 = vmatmul.mubr.msk.f32.vlgmr.msra.gmra.mxu1 %vm1086_vm3, %v1085_v4 }
0x10e6   :  { %1292 = vmatprep.mubr.msk.f32.mxu1 %vm1444_vm2, %v1440_v0  ;;  %1289 = vmatpush3.msra.mxu1 %v46_v5 }
0x10e7   :  { %1290 = vmatprep.subr.mxu1 %v1440_v0 }
0x10e8   :  { %1291 = vmatpush3.msra.mxu1 %v45_v6 }
0x11a5   :  { %v1155_v8 = vpop.f32.mrf.mxu1 }
0x11a6   :  { %v1156_v9 = vadd.f32 %v1155_v8, %v53_v7 }
0x11a7   :  { %v1287_v10 = vpop.f32.mrf.mxu1 }
0x11a8   :  { %v1159_v12 = vmax.f32 %v1156_v9, 0.0 }
0x11aa   :  { %1293 = vmatmul.mubr.msk.f32.vlgmr.msra.gmra.mxu1 %vm1160_vm4, %v1159_v12 }
0x126a   :  { %v1230_v15 = vpop.f32.mrf.mxu1 }
0x126b   :  { %v1231_v16 = vadd.f32 %v1230_v15, %v54_v13 }
0x126c   :  { %v1294_v17 = vpop.f32.mrf.mxu1 }
0x126d   :  { %1235 = vst.msk [vmem:[%s1770_s2] sm:$0x3] %vm1234_vm5, %v1231_v16 }
0x126e   :  { %1240 = vsyncpa [#allocation3], 1 }

</bundles_post_ra>
